<compile_context>
chip_gen: v5e
topology: v5e:2x2
jax: 0.10.0
libtpu: 0.0.40
codegen_flags: <defaults>
</compile_context>

<pallas_src>
import functools

import jax
import jax.numpy as jnp
from jax.experimental import pallas as pl
from jax.experimental.pallas import tpu as pltpu


# ----------------------------- in-kernel math helpers -----------------------------
def _erf_f32(x):
    # Abramowitz & Stegun 7.1.26 rational approximation, |err| <= 1.5e-7.
    # TODO(synk): exact erf (nn.GELU default) has no guaranteed Mosaic lowering; this
    # float32-accurate approximation stands in for it.  tanh-GELU / approx reciprocal were
    # considered (VALU relief) but rejected to preserve the 1e-3 accuracy budget.
    a1, a2, a3, a4, a5 = 0.254829592, -0.284496736, 1.421413741, -1.453152027, 1.061405429
    p = 0.3275911
    s = jnp.sign(x)
    ax = jnp.abs(x)
    t = 1.0 / (1.0 + p * ax)
    poly = ((((a5 * t + a4) * t + a3) * t + a2) * t + a1) * t
    return s * (1.0 - poly * jnp.exp(-ax * ax))


def _gelu(x):
    return 0.5 * x * (1.0 + _erf_f32(x * 0.7071067811865476))


def _conv3x3_planar(h, wt_ref, m_ref, w_img):
    """3x3 'same' conv in channel-planar layout.

    h:      (Ci, L) f32, lanes = (b_local, y, x) flattened, L = TB*H*W.
    wt_ref: (9, Co, Ci) per-tap weights (already transposed to (Co, Ci)).
    m_ref:  (9, L) 0/1 f32 zero-padding masks per tap.
    Returns (Co, L) raw (pre-BN, bias-free) conv output.
    """
    ci, l = h.shape
    co = wt_ref.shape[1]
    y = jnp.zeros((co, l), jnp.float32)
    for t in range(9):
        dy, dx = t // 3, t % 3
        s = (dy - 1) * w_img + (dx - 1)           # source lane offset for this tap
        if s == 0:
            src = h                               # center tap: no shift, mask is all-ones
        else:
            # out[p] = h[p + s]; circular wrap / cross-image bleed is zeroed by the mask.
            src = pltpu.roll(h, (-s) % l, 1) * m_ref[t:t + 1, :]
        y = y + jnp.dot(wt_ref[t], src, preferred_element_type=jnp.float32)
    return y


def _stats(y):
    """Per-channel sum / sum-of-squares of y (C, L) -> lane-dense (2C, 128) block."""
    ssum = jnp.sum(y, axis=1, keepdims=True)
    ssq = jnp.sum(y * y, axis=1, keepdims=True)
    st = jnp.concatenate([ssum, ssq], axis=0)     # (2C, 1)
    return jnp.broadcast_to(st, (st.shape[0], 128))


# ----------------------------------- kernels ---------------------------------------
def _conv1_kernel(x_ref, w_ref, m_ref, y_ref, st_ref, *, w_img):
    y = _conv3x3_planar(x_ref[0], w_ref, m_ref, w_img)
    y_ref[0] = y
    st_ref[0] = _stats(y)


def _stats2_kernel(y1_ref, aff_ref, w_ref, m_ref, st_ref, *, w_img):
    c = y1_ref.shape[1]
    aff = aff_ref[...]                            # (2C, 1): rows [0:C]=scale, [C:2C]=shift
    h = _gelu(y1_ref[0] * aff[:c, :] + aff[c:, :])
    st_ref[0] = _stats(_conv3x3_planar(h, w_ref, m_ref, w_img))


def _finish_kernel(y1_ref, aff1_ref, w_ref, m_ref, aff2_ref, sel_ref, o_ref, *, w_img):
    c = y1_ref.shape[1]
    l = y1_ref.shape[2]
    a1 = aff1_ref[...]
    a2 = aff2_ref[...]
    h1 = _gelu(y1_ref[0] * a1[:c, :] + a1[c:, :])
    y2 = _conv3x3_planar(h1, w_ref, m_ref, w_img)         # conv2 recomputed (y2 never hits HBM)
    h2 = _gelu(y2 * a2[:c, :] + a2[c:, :])
    # MaxPool2d(2): pair-max along x (lane+1), then along y (lane+W); even-(y,x) lanes now
    # hold the pooled value.  Wrapped lanes only land on odd (y,x) positions, which the
    # selection below never picks, so no masks are needed.
    px = jnp.maximum(h2, pltpu.roll(h2, l - 1, 1))
    py = jnp.maximum(px, pltpu.roll(px, l - w_img, 1))
    # Compact even-(y,x) lanes with a one-hot selection matmul (exact; MXU is idle here).
    o_ref[0] = jnp.dot(py, sel_ref[...], preferred_element_type=jnp.float32)


# ----------------------------------- wrapper ---------------------------------------
def _bn_affine(stats, gamma, beta, count, eps=1e-5):
    """Fold training-mode BatchNorm2d into one per-channel scale/shift from partials."""
    c = gamma.shape[0]
    ssum = jnp.sum(stats[:, :c, 0], axis=0)
    ssq = jnp.sum(stats[:, c:, 0], axis=0)
    mu = ssum / count
    var = jnp.maximum(ssq / count - mu * mu, 0.0)          # biased variance (single-pass)
    scale = gamma * jax.lax.rsqrt(var + eps)
    shift = beta - mu * scale
    # TODO(synk): running_mean/running_var buffer updates are not emulated (forward only).
    return jnp.concatenate([scale, shift], axis=0).reshape(2 * c, 1)


def _pick_batch_tile(n, bytes_per_image, target_bytes=2 << 20):
    """Largest batch tile dividing n with ~target_bytes of activation and nt >= 2."""
    tb = 1
    for cand in range(2, n + 1):
        if n % cand or n // cand < 2:
            continue
        if cand * bytes_per_image > target_bytes:
            continue
        tb = cand
    return tb


def unet_down(x_nchw, params):
    """UnetDown forward. x_nchw: (N, Cin, H, W) -> (N, Cout, H//2, W//2)."""
    x = x_nchw.astype(jnp.float32)
    n, cin, h_img, w_img = x.shape
    cout = params["w1"].shape[-1]
    assert h_img % 2 == 0 and w_img % 2 == 0
    hw = h_img * w_img
    hp, wp = h_img // 2, w_img // 2

    tb = _pick_batch_tile(n, cout * hw * 4)
    assert n % tb == 0
    nt = n // tb
    l = tb * hw
    lp = l // 4

    # ---- wrapper-side layout plumbing (tiny XLA ops, run once) ----
    # Channel-planar blocks: lanes = (b_local, y, x) flattened, channels on sublanes.
    xb = x.reshape(nt, tb, cin, hw).transpose(0, 2, 1, 3).reshape(nt, cin, l)
    # Per-tap weights transposed to (Co, Ci) so the MXU streams the long spatial axis.
    w1t = jnp.transpose(params["w1"].astype(jnp.float32), (0, 1, 3, 2)).reshape(9, cout, cin)
    w2t = jnp.transpose(params["w2"].astype(jnp.float32), (0, 1, 3, 2)).reshape(9, cout, cout)
    g1 = params["g1"].astype(jnp.float32)
    be1 = params["be1"].astype(jnp.float32)
    g2 = params["g2"].astype(jnp.float32)
    be2 = params["be2"].astype(jnp.float32)
    # NOTE: conv biases b1/b2 are intentionally unused - training-mode BN's mean
    # subtraction cancels them exactly.

    # Per-tap zero-padding masks over the flattened (b_local, y, x) lane axis.
    yy = jnp.arange(h_img).reshape(h_img, 1)
    xx = jnp.arange(w_img).reshape(1, w_img)
    rows = []
    for dy in range(3):
        for dx in range(3):
            ok = ((yy + dy - 1 >= 0) & (yy + dy - 1 < h_img) &
                  (xx + dx - 1 >= 0) & (xx + dx - 1 < w_img))
            rows.append(jnp.tile(ok.reshape(hw), (tb,)))
    masks = jnp.stack(rows, axis=0).astype(jnp.float32)                     # (9, L)

    # One-hot selection matrix compacting even-(y,x) lanes after the 2x2 pool.
    bi = jnp.arange(tb).reshape(tb, 1, 1)
    yo = jnp.arange(hp).reshape(1, hp, 1)
    xo = jnp.arange(wp).reshape(1, 1, wp)
    src = (bi * hw + 2 * yo * w_img + 2 * xo).reshape(lp)
    sel = (jnp.arange(l).reshape(l, 1) == src.reshape(1, lp)).astype(jnp.float32)  # (L, Lp)

    cparams = pltpu.CompilerParams(dimension_semantics=("parallel",),
                                   vmem_limit_bytes=32 * 1024 * 1024)
    count = jnp.float32(n * hw)

    act_spec = pl.BlockSpec((1, cout, l), lambda i: (i, 0, 0))
    st_spec = pl.BlockSpec((1, 2 * cout, 128), lambda i: (i, 0, 0))
    st_shape = jax.ShapeDtypeStruct((nt, 2 * cout, 128), jnp.float32)
    aff_spec = pl.BlockSpec((2 * cout, 1), lambda i: (0, 0))
    msk_spec = pl.BlockSpec((9, l), lambda i: (0, 0))
    w2_spec = pl.BlockSpec((9, cout, cout), lambda i: (0, 0, 0))

    # ---- pass 1: conv1 (9 shifted-tap MXU matmuls) + BN1 partial stats ----
    y1, st1 = pl.pallas_call(
        functools.partial(_conv1_kernel, w_img=w_img),
        out_shape=(jax.ShapeDtypeStruct((nt, cout, l), jnp.float32), st_shape),
        grid=(nt,),
        in_specs=[pl.BlockSpec((1, cin, l), lambda i: (i, 0, 0)),
                  pl.BlockSpec((9, cout, cin), lambda i: (0, 0, 0)),
                  msk_spec],
        out_specs=(act_spec, st_spec),
        compiler_params=cparams,
    )(xb, w1t, masks)
    aff1 = _bn_affine(st1, g1, be1, count)

    # ---- pass 2: BN1 + GELU + conv2, emitting only BN2 partial stats (y2 never stored) ----
    st2 = pl.pallas_call(
        functools.partial(_stats2_kernel, w_img=w_img),
        out_shape=st_shape,
        grid=(nt,),
        in_specs=[act_spec, aff_spec, w2_spec, msk_spec],
        out_specs=st_spec,
        compiler_params=cparams,
    )(y1, aff1, w2t, masks)
    aff2 = _bn_affine(st2, g2, be2, count)

    # ---- pass 3: BN1+GELU+conv2 (recomputed) + BN2 + GELU + MaxPool2d(2) ----
    pooled = pl.pallas_call(
        functools.partial(_finish_kernel, w_img=w_img),
        out_shape=jax.ShapeDtypeStruct((nt, cout, lp), jnp.float32),
        grid=(nt,),
        in_specs=[act_spec, aff_spec, w2_spec, msk_spec, aff_spec,
                  pl.BlockSpec((l, lp), lambda i: (0, 0))],
        out_specs=pl.BlockSpec((1, cout, lp), lambda i: (i, 0, 0)),
        compiler_params=cparams,
    )(y1, aff1, w2t, masks, aff2, sel)

    out = pooled.reshape(nt, cout, tb, hp, wp).transpose(0, 2, 1, 3, 4)
    return out.reshape(n, cout, hp, wp)


# ------------------------------ pure-JAX reference ---------------------------------
def unet_down_reference(x_nchw, params):
    x = jnp.transpose(x_nchw, (0, 2, 3, 1)).astype(jnp.float32)
    n, h, w, _ = x.shape

    def conv3x3(a, wt, b):
        return jax.lax.conv_general_dilated(
            a, wt, window_strides=(1, 1), padding="SAME",
            dimension_numbers=("NHWC", "HWIO", "NHWC")) + b

    def bn(a, g, be, eps=1e-5):
        mu = a.mean(axis=(0, 1, 2))
        var = ((a - mu) ** 2).mean(axis=(0, 1, 2))
        return (a - mu) / jnp.sqrt(var + eps) * g + be

    def gelu(a):
        return 0.5 * a * (1.0 + jax.lax.erf(a / jnp.float32(jnp.sqrt(2.0))))

    h1 = gelu(bn(conv3x3(x, params["w1"], params["b1"]), params["g1"], params["be1"]))
    h2 = gelu(bn(conv3x3(h1, params["w2"], params["b2"]), params["g2"], params["be2"]))
    cout = h2.shape[-1]
    pooled = h2.reshape(n, h // 2, 2, w // 2, 2, cout).max(axis=(2, 4))
    return jnp.transpose(pooled, (0, 3, 1, 2))


if __name__ == "__main__":
    N, Cin, Cout, H, W = 2, 4, 8, 16, 16
    key = jax.random.PRNGKey(0)
    ks = jax.random.split(key, 9)
    x = jax.random.normal(ks[0], (N, Cin, H, W), jnp.float32)
    params = {
        "w1": 0.2 * jax.random.normal(ks[1], (3, 3, Cin, Cout), jnp.float32),
        "b1": 0.1 * jax.random.normal(ks[2], (Cout,), jnp.float32),
        "g1": 1.0 + 0.1 * jax.random.normal(ks[3], (Cout,), jnp.float32),
        "be1": 0.1 * jax.random.normal(ks[4], (Cout,), jnp.float32),
        "w2": 0.2 * jax.random.normal(ks[5], (3, 3, Cout, Cout), jnp.float32),
        "b2": 0.1 * jax.random.normal(ks[6], (Cout,), jnp.float32),
        "g2": 1.0 + 0.1 * jax.random.normal(ks[7], (Cout,), jnp.float32),
        "be2": 0.1 * jax.random.normal(ks[8], (Cout,), jnp.float32),
    }

    out = jax.block_until_ready(unet_down(x, params))
    assert out.shape == (N, Cout, H // 2, W // 2), out.shape

    ref = unet_down_reference(x, params)
    max_err = float(jnp.max(jnp.abs(out - ref)))
    if not (max_err < 1e-3):
        raise SystemExit(f"numerical mismatch vs reference: max_err={max_err}")
    print("KERNEL_OK")
</pallas_src>

<mosaic_0001>
module attributes {stable_mosaic.version = 11 : i64} {
  func.func @_conv1_kernel(%arg0: i32, %arg1: memref<1x4x256xf32, #tpu.memory_space<vmem>>, %arg2: memref<9x8x4xf32, #tpu.memory_space<vmem>>, %arg3: memref<9x256xf32, #tpu.memory_space<vmem>>, %arg4: memref<1x8x256xf32, #tpu.memory_space<vmem>>, %arg5: memref<1x16x128xf32, #tpu.memory_space<vmem>>) attributes {dimension_semantics = [#tpu.dimension_semantics<parallel>], iteration_bounds = array<i64: 2>, scalar_prefetch = 0 : i64, scratch_operands = 0 : i64, tpu.core_type = #tpu.core_type<tc>, window_params = [{transform_indices = @transform_0, window_bounds = array<i64: 1, 4, 256>}, {pipeline_mode = #tpu.pipeline_mode<synchronous>, transform_indices = @transform_1, window_bounds = array<i64: 9, 8, 4>}, {pipeline_mode = #tpu.pipeline_mode<synchronous>, transform_indices = @transform_2, window_bounds = array<i64: 9, 256>}, {transform_indices = @transform_3, window_bounds = array<i64: 1, 8, 256>}, {transform_indices = @transform_4, window_bounds = array<i64: 1, 16, 128>}]} {
    %c0 = arith.constant 0 : index
    %c0_0 = arith.constant 0 : index
    %c0_1 = arith.constant 0 : index
    %0 = vector.load %arg1[%c0, %c0_0, %c0_1] : memref<1x4x256xf32, #tpu.memory_space<vmem>>, vector<1x4x256xf32>
    %1 = vector.shape_cast %0 : vector<1x4x256xf32> to vector<4x256xf32>
    %cst = arith.constant 0.000000e+00 : f32
    %2 = vector.broadcast %cst : f32 to vector<8x256xf32>
    %c17_i32 = arith.constant 17 : i32
    %3 = tpu.dynamic_rotate %1 by %c17_i32 dim 1 : vector<4x256xf32>, i32 -> vector<4x256xf32>
    %c0_2 = arith.constant 0 : index
    %c0_3 = arith.constant 0 : index
    %4 = vector.load %arg3[%c0_2, %c0_3] : memref<9x256xf32, #tpu.memory_space<vmem>>, vector<1x256xf32>
    %5 = vector.broadcast %4 : vector<1x256xf32> to vector<4x256xf32>
    %6 = arith.mulf %3, %5 : vector<4x256xf32>
    %c0_4 = arith.constant 0 : index
    %c0_5 = arith.constant 0 : index
    %c0_6 = arith.constant 0 : index
    %7 = vector.load %arg2[%c0_4, %c0_5, %c0_6] : memref<9x8x4xf32, #tpu.memory_space<vmem>>, vector<1x8x4xf32>
    %8 = vector.shape_cast %7 : vector<1x8x4xf32> to vector<8x4xf32>
    %cst_7 = arith.constant dense<0.000000e+00> : vector<8x256xf32>
    %9 = tpu.matmul %8, %6, %cst_7 {dimension_numbers = #tpu.dot_dimension_numbers<[1], [0], [0], [1], [0, 0, 1, 1], [], []>} : vector<8x4xf32>, vector<4x256xf32>, vector<8x256xf32> -> vector<8x256xf32>
    %10 = arith.addf %2, %9 : vector<8x256xf32>
    %c16_i32 = arith.constant 16 : i32
    %11 = tpu.dynamic_rotate %1 by %c16_i32 dim 1 : vector<4x256xf32>, i32 -> vector<4x256xf32>
    %c1 = arith.constant 1 : index
    %c0_8 = arith.constant 0 : index
    %12 = vector.load %arg3[%c1, %c0_8] : memref<9x256xf32, #tpu.memory_space<vmem>>, vector<1x256xf32>
    %13 = vector.broadcast %12 : vector<1x256xf32> to vector<4x256xf32>
    %14 = arith.mulf %11, %13 : vector<4x256xf32>
    %c1_9 = arith.constant 1 : index
    %c0_10 = arith.constant 0 : index
    %c0_11 = arith.constant 0 : index
    %15 = vector.load %arg2[%c1_9, %c0_10, %c0_11] : memref<9x8x4xf32, #tpu.memory_space<vmem>>, vector<1x8x4xf32>
    %16 = vector.shape_cast %15 : vector<1x8x4xf32> to vector<8x4xf32>
    %cst_12 = arith.constant dense<0.000000e+00> : vector<8x256xf32>
    %17 = tpu.matmul %16, %14, %cst_12 {dimension_numbers = #tpu.dot_dimension_numbers<[1], [0], [0], [1], [0, 0, 1, 1], [], []>} : vector<8x4xf32>, vector<4x256xf32>, vector<8x256xf32> -> vector<8x256xf32>
    %18 = arith.addf %10, %17 : vector<8x256xf32>
    %c15_i32 = arith.constant 15 : i32
    %19 = tpu.dynamic_rotate %1 by %c15_i32 dim 1 : vector<4x256xf32>, i32 -> vector<4x256xf32>
    %c2 = arith.constant 2 : index
    %c0_13 = arith.constant 0 : index
    %20 = vector.load %arg3[%c2, %c0_13] : memref<9x256xf32, #tpu.memory_space<vmem>>, vector<1x256xf32>
    %21 = vector.broadcast %20 : vector<1x256xf32> to vector<4x256xf32>
    %22 = arith.mulf %19, %21 : vector<4x256xf32>
    %c2_14 = arith.constant 2 : index
    %c0_15 = arith.constant 0 : index
    %c0_16 = arith.constant 0 : index
    %23 = vector.load %arg2[%c2_14, %c0_15, %c0_16] : memref<9x8x4xf32, #tpu.memory_space<vmem>>, vector<1x8x4xf32>
    %24 = vector.shape_cast %23 : vector<1x8x4xf32> to vector<8x4xf32>
    %cst_17 = arith.constant dense<0.000000e+00> : vector<8x256xf32>
    %25 = tpu.matmul %24, %22, %cst_17 {dimension_numbers = #tpu.dot_dimension_numbers<[1], [0], [0], [1], [0, 0, 1, 1], [], []>} : vector<8x4xf32>, vector<4x256xf32>, vector<8x256xf32> -> vector<8x256xf32>
    %26 = arith.addf %18, %25 : vector<8x256xf32>
    %c1_i32 = arith.constant 1 : i32
    %27 = tpu.dynamic_rotate %1 by %c1_i32 dim 1 : vector<4x256xf32>, i32 -> vector<4x256xf32>
    %c3 = arith.constant 3 : index
    %c0_18 = arith.constant 0 : index
    %28 = vector.load %arg3[%c3, %c0_18] : memref<9x256xf32, #tpu.memory_space<vmem>>, vector<1x256xf32>
    %29 = vector.broadcast %28 : vector<1x256xf32> to vector<4x256xf32>
    %30 = arith.mulf %27, %29 : vector<4x256xf32>
    %c3_19 = arith.constant 3 : index
    %c0_20 = arith.constant 0 : index
    %c0_21 = arith.constant 0 : index
    %31 = vector.load %arg2[%c3_19, %c0_20, %c0_21] : memref<9x8x4xf32, #tpu.memory_space<vmem>>, vector<1x8x4xf32>
    %32 = vector.shape_cast %31 : vector<1x8x4xf32> to vector<8x4xf32>
    %cst_22 = arith.constant dense<0.000000e+00> : vector<8x256xf32>
    %33 = tpu.matmul %32, %30, %cst_22 {dimension_numbers = #tpu.dot_dimension_numbers<[1], [0], [0], [1], [0, 0, 1, 1], [], []>} : vector<8x4xf32>, vector<4x256xf32>, vector<8x256xf32> -> vector<8x256xf32>
    %34 = arith.addf %26, %33 : vector<8x256xf32>
    %c4 = arith.constant 4 : index
    %c0_23 = arith.constant 0 : index
    %c0_24 = arith.constant 0 : index
    %35 = vector.load %arg2[%c4, %c0_23, %c0_24] : memref<9x8x4xf32, #tpu.memory_space<vmem>>, vector<1x8x4xf32>
    %36 = vector.shape_cast %35 : vector<1x8x4xf32> to vector<8x4xf32>
    %cst_25 = arith.constant dense<0.000000e+00> : vector<8x256xf32>
    %37 = tpu.matmul %36, %1, %cst_25 {dimension_numbers = #tpu.dot_dimension_numbers<[1], [0], [0], [1], [0, 0, 1, 1], [], []>} : vector<8x4xf32>, vector<4x256xf32>, vector<8x256xf32> -> vector<8x256xf32>
    %38 = arith.addf %34, %37 : vector<8x256xf32>
    %c255_i32 = arith.constant 255 : i32
    %39 = tpu.dynamic_rotate %1 by %c255_i32 dim 1 : vector<4x256xf32>, i32 -> vector<4x256xf32>
    %c5 = arith.constant 5 : index
    %c0_26 = arith.constant 0 : index
    %40 = vector.load %arg3[%c5, %c0_26] : memref<9x256xf32, #tpu.memory_space<vmem>>, vector<1x256xf32>
    %41 = vector.broadcast %40 : vector<1x256xf32> to vector<4x256xf32>
    %42 = arith.mulf %39, %41 : vector<4x256xf32>
    %c5_27 = arith.constant 5 : index
    %c0_28 = arith.constant 0 : index
    %c0_29 = arith.constant 0 : index
    %43 = vector.load %arg2[%c5_27, %c0_28, %c0_29] : memref<9x8x4xf32, #tpu.memory_space<vmem>>, vector<1x8x4xf32>
    %44 = vector.shape_cast %43 : vector<1x8x4xf32> to vector<8x4xf32>
    %cst_30 = arith.constant dense<0.000000e+00> : vector<8x256xf32>
    %45 = tpu.matmul %44, %42, %cst_30 {dimension_numbers = #tpu.dot_dimension_numbers<[1], [0], [0], [1], [0, 0, 1, 1], [], []>} : vector<8x4xf32>, vector<4x256xf32>, vector<8x256xf32> -> vector<8x256xf32>
    %46 = arith.addf %38, %45 : vector<8x256xf32>
    %c241_i32 = arith.constant 241 : i32
    %47 = tpu.dynamic_rotate %1 by %c241_i32 dim 1 : vector<4x256xf32>, i32 -> vector<4x256xf32>
    %c6 = arith.constant 6 : index
    %c0_31 = arith.constant 0 : index
    %48 = vector.load %arg3[%c6, %c0_31] : memref<9x256xf32, #tpu.memory_space<vmem>>, vector<1x256xf32>
    %49 = vector.broadcast %48 : vector<1x256xf32> to vector<4x256xf32>
    %50 = arith.mulf %47, %49 : vector<4x256xf32>
    %c6_32 = arith.constant 6 : index
    %c0_33 = arith.constant 0 : index
    %c0_34 = arith.constant 0 : index
    %51 = vector.load %arg2[%c6_32, %c0_33, %c0_34] : memref<9x8x4xf32, #tpu.memory_space<vmem>>, vector<1x8x4xf32>
    %52 = vector.shape_cast %51 : vector<1x8x4xf32> to vector<8x4xf32>
    %cst_35 = arith.constant dense<0.000000e+00> : vector<8x256xf32>
    %53 = tpu.matmul %52, %50, %cst_35 {dimension_numbers = #tpu.dot_dimension_numbers<[1], [0], [0], [1], [0, 0, 1, 1], [], []>} : vector<8x4xf32>, vector<4x256xf32>, vector<8x256xf32> -> vector<8x256xf32>
    %54 = arith.addf %46, %53 : vector<8x256xf32>
    %c240_i32 = arith.constant 240 : i32
    %55 = tpu.dynamic_rotate %1 by %c240_i32 dim 1 : vector<4x256xf32>, i32 -> vector<4x256xf32>
    %c7 = arith.constant 7 : index
    %c0_36 = arith.constant 0 : index
    %56 = vector.load %arg3[%c7, %c0_36] : memref<9x256xf32, #tpu.memory_space<vmem>>, vector<1x256xf32>
    %57 = vector.broadcast %56 : vector<1x256xf32> to vector<4x256xf32>
    %58 = arith.mulf %55, %57 : vector<4x256xf32>
    %c7_37 = arith.constant 7 : index
    %c0_38 = arith.constant 0 : index
    %c0_39 = arith.constant 0 : index
    %59 = vector.load %arg2[%c7_37, %c0_38, %c0_39] : memref<9x8x4xf32, #tpu.memory_space<vmem>>, vector<1x8x4xf32>
    %60 = vector.shape_cast %59 : vector<1x8x4xf32> to vector<8x4xf32>
    %cst_40 = arith.constant dense<0.000000e+00> : vector<8x256xf32>
    %61 = tpu.matmul %60, %58, %cst_40 {dimension_numbers = #tpu.dot_dimension_numbers<[1], [0], [0], [1], [0, 0, 1, 1], [], []>} : vector<8x4xf32>, vector<4x256xf32>, vector<8x256xf32> -> vector<8x256xf32>
    %62 = arith.addf %54, %61 : vector<8x256xf32>
    %c239_i32 = arith.constant 239 : i32
    %63 = tpu.dynamic_rotate %1 by %c239_i32 dim 1 : vector<4x256xf32>, i32 -> vector<4x256xf32>
    %c8 = arith.constant 8 : index
    %c0_41 = arith.constant 0 : index
    %64 = vector.load %arg3[%c8, %c0_41] : memref<9x256xf32, #tpu.memory_space<vmem>>, vector<1x256xf32>
    %65 = vector.broadcast %64 : vector<1x256xf32> to vector<4x256xf32>
    %66 = arith.mulf %63, %65 : vector<4x256xf32>
    %c8_42 = arith.constant 8 : index
    %c0_43 = arith.constant 0 : index
    %c0_44 = arith.constant 0 : index
    %67 = vector.load %arg2[%c8_42, %c0_43, %c0_44] : memref<9x8x4xf32, #tpu.memory_space<vmem>>, vector<1x8x4xf32>
    %68 = vector.shape_cast %67 : vector<1x8x4xf32> to vector<8x4xf32>
    %cst_45 = arith.constant dense<0.000000e+00> : vector<8x256xf32>
    %69 = tpu.matmul %68, %66, %cst_45 {dimension_numbers = #tpu.dot_dimension_numbers<[1], [0], [0], [1], [0, 0, 1, 1], [], []>} : vector<8x4xf32>, vector<4x256xf32>, vector<8x256xf32> -> vector<8x256xf32>
    %70 = arith.addf %62, %69 : vector<8x256xf32>
    %c0_46 = arith.constant 0 : index
    %c0_47 = arith.constant 0 : index
    %c0_48 = arith.constant 0 : index
    %71 = vector.load %arg4[%c0_46, %c0_47, %c0_48] : memref<1x8x256xf32, #tpu.memory_space<vmem>>, vector<1x8x256xf32>
    %72 = vector.shape_cast %71 : vector<1x8x256xf32> to vector<8x256xf32>
    %73 = vector.shape_cast %70 : vector<8x256xf32> to vector<1x8x256xf32>
    tpu.vector_store %arg4[%c0_46, %c0_47, %c0_48], %73 {strides = array<i32>} : memref<1x8x256xf32, #tpu.memory_space<vmem>>, vector<1x8x256xf32>,
    %cst_49 = arith.constant dense<0.000000e+00> : vector<8xf32>
    %74 = vector.multi_reduction <add>, %70, %cst_49 [1] : vector<8x256xf32> to vector<8xf32>
    %75 = vector.shape_cast %74 : vector<8xf32> to vector<8x1xf32>
    %76 = arith.mulf %70, %70 : vector<8x256xf32>
    %cst_50 = arith.constant dense<0.000000e+00> : vector<8xf32>
    %77 = vector.multi_reduction <add>, %76, %cst_50 [1] : vector<8x256xf32> to vector<8xf32>
    %78 = vector.shape_cast %77 : vector<8xf32> to vector<8x1xf32>
    %79 = tpu.concatenate %75, %78 in 0 : vector<8x1xf32>, vector<8x1xf32> -> vector<16x1xf32>
    %80 = vector.shape_cast %79 : vector<16x1xf32> to vector<16x1xf32>
    %81 = vector.broadcast %80 : vector<16x1xf32> to vector<16x128xf32>
    %c0_51 = arith.constant 0 : index
    %c0_52 = arith.constant 0 : index
    %c0_53 = arith.constant 0 : index
    %82 = vector.load %arg5[%c0_51, %c0_52, %c0_53] : memref<1x16x128xf32, #tpu.memory_space<vmem>>, vector<1x16x128xf32>
    %83 = vector.shape_cast %82 : vector<1x16x128xf32> to vector<16x128xf32>
    %84 = vector.shape_cast %81 : vector<16x128xf32> to vector<1x16x128xf32>
    tpu.vector_store %arg5[%c0_51, %c0_52, %c0_53], %84 {strides = array<i32>} : memref<1x16x128xf32, #tpu.memory_space<vmem>>, vector<1x16x128xf32>,
    return
  }
  func.func @transform_0(%arg0: i32) -> (i32, i32, i32) {
    %c0_i32 = arith.constant 0 : i32
    %c0_i32_0 = arith.constant 0 : i32
    %c0_i32_1 = arith.constant 0 : i32
    return %arg0, %c0_i32, %c0_i32_0 : i32, i32, i32
  }
  func.func @transform_1(%arg0: i32) -> (i32, i32, i32) {
    %c0_i32 = arith.constant 0 : i32
    %c0_i32_0 = arith.constant 0 : i32
    %c0_i32_1 = arith.constant 0 : i32
    %c0_i32_2 = arith.constant 0 : i32
    return %c0_i32, %c0_i32_0, %c0_i32_1 : i32, i32, i32
  }
  func.func @transform_2(%arg0: i32) -> (i32, i32) {
    %c0_i32 = arith.constant 0 : i32
    %c0_i32_0 = arith.constant 0 : i32
    %c0_i32_1 = arith.constant 0 : i32
    return %c0_i32, %c0_i32_0 : i32, i32
  }
  func.func @transform_3(%arg0: i32) -> (i32, i32, i32) {
    %c0_i32 = arith.constant 0 : i32
    %c0_i32_0 = arith.constant 0 : i32
    %c0_i32_1 = arith.constant 0 : i32
    return %arg0, %c0_i32, %c0_i32_0 : i32, i32, i32
  }
  func.func @transform_4(%arg0: i32) -> (i32, i32, i32) {
    %c0_i32 = arith.constant 0 : i32
    %c0_i32_0 = arith.constant 0 : i32
    %c0_i32_1 = arith.constant 0 : i32
    return %arg0, %c0_i32, %c0_i32_0 : i32, i32, i32
  }
}

</mosaic_0001>

<bundles_post_ra>
// kernel: tpu_custom_call.1
= control target key start
LH: loop header
LB: loop body
LE: loop exit
PB: predicated region body
PF: predicated region fallthrough
CT: control target
= control target key end

     0   :  { %10 = vsyncpa [#allocation3], 0  ;;  %s1474_s0 = inlined_call_operand.vmem [shape: f32[2,4,256], index: 0, kind: input, shape index: {}]   ;;  %s1475_s1 = inlined_call_operand.vmem [shape: f32[9,8,4], index: 1, kind: input, shape index: {}]   ;;  %s1476_s2 = inlined_call_operand.vmem [shape: f32[9,256], index: 2, kind: input, shape index: {}]   ;;  %s1477_s3 = inlined_call_operand.hbm [shape: f32[2,8,256], index: 3, kind: output, shape index: {0}]   ;;  %s1478_s4 = inlined_call_operand.hbm [shape: f32[2,16,128], index: 4, kind: output, shape index: {1}]  }
   0x1   :  { %12 = vsyncpa [#allocation3 + $0x1], 0 }
   0x2   :  { %13 = vsyncpa [#allocation5], 0 }
   0x3   :  { %15 = vsyncpa [#allocation5 + $0x1], 0  ;;  %s1264_s15 = smov 0   ;;  %s1266_s16 = smov 0  }
   0x4   :  { %s1268_s17 = smov 0   ;;  %s1270_s18 = smov 0  }
   0x5 LB: > { %s1285_s19 = sadd.s32 4294967295, %s1226_s18   ;;  %s1006_s20 = sadd.s32 4294967294, %s1226_s18   ;;  %s1226_s18 = sphi %s1270_s18, %s1484_s18   ;;  %s1222_s17 = sphi %s1268_s17, %s1483_s17   ;;  %s1218_s16 = sphi %s1266_s16, %s1482_s16   ;;  %s1214_s15 = sphi %s1264_s15, %s1481_s15  }
   0x6   : > { %s1289_s21 = sadd.s32 1, %s1226_s18   ;;  %s96_s22 = sadd.s32 1, %s1222_s17 }
   0x7   : > { %s93_s23 = ssub.s32 %s1226_s18, %s1289_s21  ;;  %p106_p0 = scmp.ne.s32.totalorder %s1222_s17, %s1218_s16 }
   0x8   : > { %p94_p1 = scmp.eq.s32.totalorder %s93_s23, 0  ;;  %p107_p2 = scmp.eq.s32.totalorder %s1285_s19, 1 }
   0x9   : > { %p112_p3 = scmp.ne.s32.totalorder %s1218_s16, %s1214_s15  ;;  %p113_p4 = scmp.eq.s32.totalorder %s1006_s20, 1 }
   0xa   : > { %s1300_s24 = scalar_select %p94_p1, %s1222_s17, %s96_s22  }
   0xb   : > { %p1302_p5 = por %p107_p2, %p106_p0  ;;  %p1306_p6 = por %p113_p4, %p112_p3 }
   0xc   : > { %p1009_p7 = scmp.ge.s32.totalorder %s1226_s18, 1  ;;  %p171_p8 = scmp.lt.s32.totalorder %s1226_s18, 3 }
   0xe   : > { %p172_p9 = pnand %p1009_p7, %p171_p8 }
   0xf   : > { %p202_p10 = scmp.lt.s32.totalorder (!%p172_p9), %s1285_s19, 1  ;;  %s1228_s6 = smov (!%p172_p9), 17  }
  0x10   : > { %175 = sbr.rel (%p172_p9) target bundleno = 590 (0x24e), region = 32  ;;  %s1229_s7 = smov (!%p172_p9), 16  }
  0x11   : > { %s1230_s8 = smov (!%p172_p9), 15   ;;  %s1231_s9 = smov (!%p172_p9), 1  }
  0x12   : > { %s1232_s10 = smov (!%p172_p9), 127   ;;  %s1233_s11 = smov (!%p172_p9), 113  }
  0x13   : > { %s1234_s12 = smov (!%p172_p9), 112   ;;  %s1235_s13 = smov (!%p172_p9), 111  }
  0x14   : > { %s1421_s14 = sand.u32 (!%p172_p9), 1, %s1218_s16   ;;  %s1074_s23 = sshll.u32 (!%p172_p9), %s1285_s19, 4 }
  0x15   : > { %s203_s27 = scalar_select %p202_p10, %s1285_s19, 1  ;;  %v218_v19 = vlaneseq  ;;  %v223_v23 = vld [vmem:[%s1476_s2] ss:$8 sm:$0x3]  ;;  %vm259_vm1 = vcmask 1043456   ;;  %vm255_vm2 = vcmask 31744  }
  0x16   : > { %v225_v24 = vperm.slane %v223_v23, 0  ;;  %v226_v25 = vperm.slane %v223_v23, 1  ;;  %v231_v32 = vld [vmem:[%s1475_s1] sm:$0xff]  ;;  %v1015_v47 = vld [vmem:[%s1475_s1 + $0x8] sm:$0xff]  ;;  %v1025_v59 = vld [vmem:[%s1475_s1 + $0x10] sm:$0xff]  ;;  %s1010_s20 = sshll.u32 %s1421_s14, 4  ;;  %s892_s29 = scalar_lea.hbm %s1477_s3, %s1074_s23 }
  0x17   : > { %s1073_s28 = sshll.u32 %s203_s27, 3  ;;  %v1321_v21 = vand.u32 127, %v218_v19  ;;  %v1014_v33 = vld [vmem:[%s1476_s2 + $0x1] ss:$8 sm:$0x3]  ;;  %v1031_v60 = vld [vmem:[%s1475_s1 + $0x18] sm:$0xff] }
  0x18   : > { %s206_s5 = scalar_lea.vmem %s1474_s0, %s1073_s28  ;;  %v1024_v34 = vld [vmem:[%s1476_s2 + $0x2] ss:$8 sm:$0x3]  ;;  %v247_v36 = vperm.slane %v1014_v33, 0  ;;  %v248_v37 = vperm.slane %v1014_v33, 1  ;;  %s194_s22 = scalar_lea.vmem [#allocation2], %s1010_s20 }
  0x19   : > { %v207_v0 = vld [vmem:[%s206_s5] sm:$0xff]  ;;  %vm220_vm0 = vcmp.lt.s32.totalorder %v1321_v21, 17  ;;  %vm364_vm3 = vcmp.lt.s32.totalorder %v1321_v21, 15  ;;  %vm241_vm4 = vcmp.lt.s32.totalorder %v1321_v21, 16  ;;  %v370_v38 = vperm.slane %v1024_v34, 0  ;;  %s894_s30 = sshll.u32 %s194_s22, 4  ;;  %s895_s30 = int_to_ptr.vmem [resolvable:$true] %s894_s30 }
  0x1a   : > { %209 = vst [vmem:[#allocation1] ss:$2 sm:$0xff] %v207_v0  ;;  %v371_v39 = vperm.slane %v1024_v34, 1  ;;  %v1030_v50 = vld [vmem:[%s1476_s2 + $0x3] ss:$8 sm:$0x3] }
  0x1b   : > { %vm438_vm5 = vcmp.lt.s32.totalorder %v1321_v21, 1  ;;  %v444_v51 = vperm.slane %v1030_v50, 0  ;;  %v445_v52 = vperm.slane %v1030_v50, 1  ;;  %v1036_v61 = vld [vmem:[%s1475_s1 + $0x20] sm:$0xff]  ;;  %vm566_vm6 = vcmp.lt.s32.totalorder %v1321_v21, 127  ;;  %s896_s5 = sshll.u32 %s892_s29, 4  ;;  %s897_s5 = int_to_ptr.hbm [resolvable:$true] %s896_s5 }
  0x1c   : > { %v1041_v62 = vld [vmem:[%s1476_s2 + $0x5] ss:$8 sm:$0x3]  ;;  %vm640_vm7 = vcmp.lt.s32.totalorder %v1321_v21, 113  ;;  %vm714_vm8 = vcmp.lt.s32.totalorder %v1321_v21, 112  ;;  %vm788_vm9 = vcmp.lt.s32.totalorder %v1321_v21, 111 }
  0x1d   : > { %s1152_s19 = scalar_lea.hbm %s1477_s3, 32 }
  0x21   : > { %v210_v1 = vld.sshfl [vmem:[#allocation1] sm:$0xff pattern:$0x75316420]  ;;  %v211_v2 = vld.sshfl [vmem:[#allocation1 + $0x8] sm:$0xff pattern:$0x75316420] }
  0x22   : > { %214 = vrot.lane.b32.xlu0 %v210_v1, %s1228_s6  ;;  %232 = vst [vmem:[#allocation1] ss:$2 sm:$0xff] %v207_v0  ;;  %v573_v1 = vperm.slane %v1041_v62, 1 }
  0x29   : > { %v233_v3 = vld.sshfl [vmem:[#allocation1] sm:$0xff pattern:$0x75316420]  ;;  %v234_v4 = vld.sshfl [vmem:[#allocation1 + $0x8] sm:$0xff pattern:$0x75316420] }
  0x2a   : > { %237 = vrot.lane.b32.xlu1 %v233_v3, %s1229_s7  ;;  %216 = vrot.lane.b32.xlu0 %v211_v2, %s1228_s6  ;;  %355 = vst [vmem:[#allocation1] ss:$2 sm:$0xff] %v207_v0  ;;  %s876_s6 = scalar_lea.sflag [#allocation3], %s1421_s14 }
  0x31   : > { %v356_v5 = vld.sshfl [vmem:[#allocation1] sm:$0xff pattern:$0x75316420]  ;;  %v357_v6 = vld.sshfl [vmem:[#allocation1 + $0x8] sm:$0xff pattern:$0x75316420] }
  0x32   : > { %239 = vrot.lane.b32.xlu1 %v234_v4, %s1229_s7  ;;  %429 = vst [vmem:[#allocation1] ss:$2 sm:$0xff] %v207_v0  ;;  %360 = vrot.lane.b32.xlu2 %v356_v5, %s1230_s8  ;;  %s1146_s7 = sshra.s32 %s897_s5, 4  ;;  %s1147_s7 = int_to_ptr.hbm [resolvable:$true] %s1146_s7 }
  0x33   : > { %p1153_p0 = scmp.lt.s32.totalorder %s1147_s7, %s1477_s3 }
  0x39   : > { %v431_v7 = vld.sshfl [vmem:[#allocation1 + $0x8] sm:$0xff pattern:$0x75316420]  ;;  %v430_v8 = vld.sshfl [vmem:[#allocation1] sm:$0xff pattern:$0x75316420] }
  0x3a   : > { %436 = vrot.lane.b32.xlu1 %v431_v7, %s1231_s9  ;;  %434 = vrot.lane.b32.xlu0 %v430_v8, %s1231_s9  ;;  %505 = vst [vmem:[#allocation1] ss:$2 sm:$0xff] %v207_v0  ;;  %v1042_v7 = vld [vmem:[%s1475_s1 + $0x28] sm:$0xff] }
  0x3b   : > { %362 = vrot.lane.b32.xlu2 %v357_v6, %s1230_s8  ;;  %v1047_v8 = vld [vmem:[%s1476_s2 + $0x6] ss:$8 sm:$0x3]  ;;  %s1148_s8 = scalar_lea.hbm %s1147_s7, 16 }
  0x3c   : > { %p1149_p11 = scmp.ne.s32.totalorder %s1147_s7, %s1148_s8  ;;  %p1154_p1 = scmp.lt.s32.totalorder %s1152_s19, %s1148_s8 }
  0x3e   : > { %p1150_p12 = pnand %p1149_p11, %p1302_p5  ;;  %p1155_p2 = por %p1154_p1, %p1153_p0 }
  0x40   : > { %p1151_p13 = pneg %p1150_p12 }
  0x41   : > { %v1317_v9 = vld.sshfl [vmem:[#allocation1] sm:$0xff pattern:$0x75316420]  ;;  %v1319_v10 = vld.sshfl [vmem:[#allocation1 + $0x8] sm:$0xff pattern:$0x75316420] }
  0x42   : > { %557 = vst [vmem:[#allocation1] ss:$2 sm:$0xff] %v207_v0  ;;  %p1156_p3 = pnand %p1155_p2, %p1151_p13 }
  0x49   : > { %v559_v11 = vld.sshfl [vmem:[#allocation1 + $0x8] sm:$0xff pattern:$0x75316420]  ;;  %v558_v12 = vld.sshfl [vmem:[#allocation1] sm:$0xff pattern:$0x75316420] }
  0x4a   : > { %564 = vrot.lane.b32.xlu0 %v559_v11, %s1232_s10  ;;  %631 = vst [vmem:[#allocation1] ss:$2 sm:$0xff] %v207_v0  ;;  %562 = vrot.lane.b32.xlu2 %v558_v12, %s1232_s10  ;;  %v647_v11 = vperm.slane %v1047_v8, 1 }
  0x51   : > { %v632_v13 = vld.sshfl [vmem:[#allocation1] sm:$0xff pattern:$0x75316420]  ;;  %v633_v14 = vld.sshfl [vmem:[#allocation1 + $0x8] sm:$0xff pattern:$0x75316420] }
  0x52   : > { %636 = vrot.lane.b32.xlu1 %v632_v13, %s1233_s11  ;;  %705 = vst [vmem:[#allocation1] ss:$2 sm:$0xff] %v207_v0  ;;  %638 = vrot.lane.b32.xlu2 %v633_v14, %s1233_s11 }
  0x59   : > { %v707_v15 = vld.sshfl [vmem:[#allocation1 + $0x8] sm:$0xff pattern:$0x75316420]  ;;  %v706_v16 = vld.sshfl [vmem:[#allocation1] sm:$0xff pattern:$0x75316420] }
  0x5a   : > { %712 = vrot.lane.b32.xlu1 %v707_v15, %s1234_s12  ;;  %710 = vrot.lane.b32.xlu0 %v706_v16, %s1234_s12  ;;  %779 = vst [vmem:[#allocation1] ss:$2 sm:$0xff] %v207_v0  ;;  %v572_v0 = vperm.slane %v1041_v62, 0 }
  0x61   : > { %v781_v17 = vld.sshfl [vmem:[#allocation1 + $0x8] sm:$0xff pattern:$0x75316420]  ;;  %v780_v18 = vld.sshfl [vmem:[#allocation1] sm:$0xff pattern:$0x75316420] }
  0x62   : > { %786 = vrot.lane.b32.xlu0 %v781_v17, %s1235_s13  ;;  %784 = vrot.lane.b32.xlu2 %v780_v18, %s1235_s13  ;;  %v1048_v17 = vld [vmem:[%s1475_s1 + $0x30] sm:$0xff]  ;;  %v1053_v18 = vld [vmem:[%s1476_s2 + $0x7] ss:$8 sm:$0x3] }
  0x63   : > { %v720_v19 = vperm.slane %v1053_v18, 0 }
  0x8c   : > { %v361_v22 = vpop.permute.xlu2 %360 }
  0x94   : > { %v215_v20 = vpop.permute.xlu0 %214 }
  0x95   : > { %v363_v35 = vpop.permute.xlu2 %362 }
  0x96   : > { %v365_v40 = vsel %vm364_vm3, %v361_v22, %v363_v35  ;;  %v366_v41 = vsel %vm364_vm3, %v363_v35, %v361_v22 }
  0x97   : > { %v374_v48 = vmul.f32 %v370_v38, %v366_v41  ;;  %v375_v49 = vmul.f32 %v371_v39, %v365_v40  ;;  %v1060_v38 = vld [vmem:[%s1475_s1 + $0x40] sm:$0xff] }
  0x9c   : > { %v238_v26 = vpop.permute.xlu1 %237  ;;  %v217_v27 = vpop.permute.xlu0 %216 }
  0x9d   : > { %v221_v28 = vsel %vm220_vm0, %v215_v20, %v217_v27  ;;  %v222_v29 = vsel %vm220_vm0, %v217_v27, %v215_v20  ;;  %v721_v20 = vperm.slane %v1053_v18, 1 }
  0x9e   : > { %v229_v30 = vmul.f32 %v225_v24, %v222_v29  ;;  %v230_v31 = vmul.f32 %v226_v25, %v221_v28  ;;  %v1054_v28 = vld [vmem:[%s1475_s1 + $0x38] sm:$0xff] }
  0x9f   : > { %v1059_v29 = vld [vmem:[%s1476_s2 + $0x10] ss:$8 sm:$0x3] }
  0xa0   : > { %1020 = vmatpush.msk.msra.mxu2 %vm259_vm1, %v229_v30  ;;  %1022 = vmatpush.msk.msra.mxu3 %vm259_vm1, %v230_v31  ;;  %v794_v30 = vperm.slane %v1059_v29, 0  ;;  %v795_v31 = vperm.slane %v1059_v29, 1 }
  0xa1   : > { %1021 = vmatmul.msk.f32.vlgmr.msra.gmra.mxu2 %vm255_vm2, %v231_v32  ;;  %1023 = vmatmul.msk.f32.vlgmr.msra.gmra.mxu3 %vm255_vm2, %v231_v32 }
  0xa4   : > { %v240_v42 = vpop.permute.xlu1 %239  ;;  %v563_v63 = vpop.permute.xlu2 %562 }
  0xa5   : > { %v242_v43 = vsel %vm241_vm4, %v238_v26, %v240_v42  ;;  %v243_v44 = vsel %vm241_vm4, %v240_v42, %v238_v26 }
  0xa6   : > { %v251_v45 = vmul.f32 %v247_v36, %v243_v44  ;;  %v252_v46 = vmul.f32 %v248_v37, %v242_v43  ;;  %v1236_v44 = vmov 0  }
  0xa7   : > { %1131 = vset.pattern.permute.xlu0 %v1236_v44 }
  0xa8   : > { %1016 = vmatpush.msk.msra.mxu0 %vm259_vm1, %v251_v45  ;;  %1018 = vmatpush.msk.msra.mxu1 %vm259_vm1, %v252_v46 }
  0xa9   : > { %1017 = vmatmul.msk.f32.vlgmr.msra.gmra.mxu0 %vm255_vm2, %v1015_v47  ;;  %1019 = vmatmul.msk.f32.vlgmr.msra.gmra.mxu1 %vm255_vm2, %v1015_v47 }
  0xaa   : > { %1026 = vmatpush.msk.msrb.mxu0 %vm259_vm1, %v374_v48  ;;  %1028 = vmatpush.msk.msrb.mxu1 %vm259_vm1, %v375_v49 }
  0xac   : > { %1037 = vmatpush.msk.msra.mxu0 %vm259_vm1, %v1317_v9  ;;  %1039 = vmatpush.msk.msra.mxu1 %vm259_vm1, %v1319_v10  ;;  %v437_v53 = vpop.permute.xlu1 %436  ;;  %v435_v54 = vpop.permute.xlu0 %434  ;;  %v646_v10 = vperm.slane %v1047_v8, 0 }
  0xad   : > { %v439_v55 = vsel %vm438_vm5, %v435_v54, %v437_v53  ;;  %v440_v56 = vsel %vm438_vm5, %v437_v53, %v435_v54  ;;  %v639_v9 = vpop.permute.xlu2 %638 }
  0xae   : > { %v448_v57 = vmul.f32 %v444_v51, %v440_v56  ;;  %v449_v58 = vmul.f32 %v445_v52, %v439_v55 }
  0xb0   : > { %1032 = vmatpush.msk.msrb.mxu2 %vm259_vm1, %v448_v57  ;;  %1034 = vmatpush.msk.msrb.mxu3 %vm259_vm1, %v449_v58 }
  0xb1   : > { %1027 = vmatmul.msk.f32.vlgmr.msrb.gmra.mxu0 %vm255_vm2, %v1025_v59  ;;  %1029 = vmatmul.msk.f32.vlgmr.msrb.gmra.mxu1 %vm255_vm2, %v1025_v59 }
  0xb2   : > { %1033 = vmatmul.msk.f32.vlgmr.msrb.gmra.mxu2 %vm255_vm2, %v1031_v60  ;;  %1035 = vmatmul.msk.f32.vlgmr.msrb.gmra.mxu3 %vm255_vm2, %v1031_v60 }
  0xb9   : > { %1038 = vmatmul.msk.f32.vlgmr.msra.gmra.mxu0 %vm255_vm2, %v1036_v61  ;;  %1040 = vmatmul.msk.f32.vlgmr.msra.gmra.mxu1 %vm255_vm2, %v1036_v61 }
  0xbc   : > { %v565_v2 = vpop.permute.xlu0 %564  ;;  %v785_v32 = vpop.permute.xlu2 %784 }
  0xbd   : > { %v567_v3 = vsel %vm566_vm6, %v563_v63, %v565_v2  ;;  %v568_v4 = vsel %vm566_vm6, %v565_v2, %v563_v63 }
  0xbe   : > { %v576_v5 = vmul.f32 %v572_v0, %v567_v3  ;;  %v577_v6 = vmul.f32 %v573_v1, %v568_v4 }
  0xc0   : > { %1043 = vmatpush.msk.msra.mxu2 %vm259_vm1, %v576_v5  ;;  %1045 = vmatpush.msk.msra.mxu3 %vm259_vm1, %v577_v6 }
  0xc1   : > { %1044 = vmatmul.msk.f32.vlgmr.msra.gmra.mxu2 %vm255_vm2, %v1042_v7  ;;  %1046 = vmatmul.msk.f32.vlgmr.msra.gmra.mxu3 %vm255_vm2, %v1042_v7 }
  0xc4   : > { %v637_v12 = vpop.permute.xlu1 %636 }
  0xc5   : > { %v641_v13 = vsel %vm640_vm7, %v637_v12, %v639_v9  ;;  %v642_v14 = vsel %vm640_vm7, %v639_v9, %v637_v12 }
  0xc6   : > { %v650_v15 = vmul.f32 %v646_v10, %v641_v13  ;;  %v651_v16 = vmul.f32 %v647_v11, %v642_v14 }
  0xc8   : > { %1049 = vmatpush.msk.msrb.mxu0 %vm259_vm1, %v650_v15  ;;  %1051 = vmatpush.msk.msrb.mxu1 %vm259_vm1, %v651_v16 }
  0xc9   : > { %1050 = vmatmul.msk.f32.vlgmr.msrb.gmra.mxu0 %vm255_vm2, %v1048_v17  ;;  %1052 = vmatmul.msk.f32.vlgmr.msrb.gmra.mxu1 %vm255_vm2, %v1048_v17 }
  0xcc   : > { %v713_v22 = vpop.permute.xlu1 %712  ;;  %v711_v23 = vpop.permute.xlu0 %710 }
  0xcd   : > { %v715_v24 = vsel %vm714_vm8, %v711_v23, %v713_v22  ;;  %v716_v25 = vsel %vm714_vm8, %v713_v22, %v711_v23 }
  0xce   : > { %v724_v26 = vmul.f32 %v720_v19, %v715_v24  ;;  %v725_v27 = vmul.f32 %v721_v20, %v716_v25 }
  0xd0   : > { %1055 = vmatpush.msk.msrb.mxu2 %vm259_vm1, %v724_v26  ;;  %1057 = vmatpush.msk.msrb.mxu3 %vm259_vm1, %v725_v27 }
  0xd1   : > { %1056 = vmatmul.msk.f32.vlgmr.msrb.gmra.mxu2 %vm255_vm2, %v1054_v28  ;;  %1058 = vmatmul.msk.f32.vlgmr.msrb.gmra.mxu3 %vm255_vm2, %v1054_v28 }
  0xd4   : > { %v787_v33 = vpop.permute.xlu0 %786 }
  0xd5   : > { %v789_v34 = vsel %vm788_vm9, %v785_v32, %v787_v33  ;;  %v790_v35 = vsel %vm788_vm9, %v787_v33, %v785_v32 }
  0xd6   : > { %v798_v36 = vmul.f32 %v794_v30, %v789_v34  ;;  %v799_v37 = vmul.f32 %v795_v31, %v790_v35 }
  0xd8   : > { %1061 = vmatpush.msk.msra.mxu0 %vm259_vm1, %v798_v36  ;;  %1063 = vmatpush.msk.msra.mxu1 %vm259_vm1, %v799_v37 }
  0xd9   : > { %1062 = vmatmul.msk.f32.vlgmr.msra.gmra.mxu0 %vm255_vm2, %v1060_v38  ;;  %1064 = vmatmul.msk.f32.vlgmr.msra.gmra.mxu1 %vm255_vm2, %v1060_v38 }
 0x124   : > { %v332_v40 = vpop.f32.mrf.mxu2  ;;  %v352_v41 = vpop.f32.mrf.mxu3 }
 0x126   : > { %v283_v21 = vpop.f32.mrf.mxu0  ;;  %v303_v39 = vpop.f32.mrf.mxu1 }
 0x127   : > { %v333_v45 = vadd.f32 %v332_v40, %v283_v21  ;;  %v353_v46 = vadd.f32 %v352_v41, %v303_v39 }
 0x12e   : > { %v404_v42 = vpop.f32.mrf.mxu0  ;;  %v424_v43 = vpop.f32.mrf.mxu1 }
 0x12f   : > { %v427_v49 = vadd.f32 %v404_v42, %v333_v45  ;;  %v428_v50 = vadd.f32 %v424_v43, %v353_v46 }
 0x135   : > { %v478_v47 = vpop.f32.mrf.mxu2  ;;  %v498_v48 = vpop.f32.mrf.mxu3 }
 0x136   : > { %v532_v51 = vpop.f32.mrf.mxu0  ;;  %v552_v52 = vpop.f32.mrf.mxu1  ;;  %v501_v53 = vadd.f32 %v478_v47, %v427_v49  ;;  %v502_v54 = vadd.f32 %v498_v48, %v428_v50 }
 0x138   : > { %v555_v57 = vadd.f32 %v532_v51, %v501_v53  ;;  %v556_v58 = vadd.f32 %v552_v52, %v502_v54 }
 0x144   : > { %v606_v55 = vpop.f32.mrf.mxu2  ;;  %v626_v56 = vpop.f32.mrf.mxu3 }
 0x145   : > { %v629_v61 = vadd.f32 %v606_v55, %v555_v57  ;;  %v630_v62 = vadd.f32 %v626_v56, %v556_v58 }
 0x146   : > { %v680_v59 = vpop.f32.mrf.mxu0  ;;  %v700_v60 = vpop.f32.mrf.mxu1 }
 0x147   : > { %v703_v63 = vadd.f32 %v680_v59, %v629_v61  ;;  %v704_v0 = vadd.f32 %v700_v60, %v630_v62 }
 0x154   : > { %v754_v1 = vpop.f32.mrf.mxu2  ;;  %v774_v2 = vpop.f32.mrf.mxu3 }
 0x155   : > { %v777_v3 = vadd.f32 %v754_v1, %v703_v63  ;;  %v778_v4 = vadd.f32 %v774_v2, %v704_v0 }
 0x156   : > { %v828_v5 = vpop.f32.mrf.mxu0  ;;  %v848_v6 = vpop.f32.mrf.mxu1 }
 0x157   : > { %v851_v7 = vadd.f32 %v828_v5, %v777_v3  ;;  %v852_v8 = vadd.f32 %v848_v6, %v778_v4 }
 0x159   : > { %v855_v9 = vadd.f32 %v852_v8, %v851_v7  ;;  %v858_v10 = vmul.f32 %v851_v7, %v851_v7  ;;  %v859_v11 = vmul.f32 %v852_v8, %v852_v8  ;;  %853 = vst [vmem:[%s194_s22] sm:$0xff] %v851_v7 }
 0x15a   : > { %854 = vst [vmem:[%s194_s22 + $0x8] sm:$0xff] %v852_v8 }
 0x15b   : > { %856 = vadd.xlane.f32.xlu1 %v855_v9  ;;  %v860_v12 = vadd.f32 %v859_v11, %v858_v10 }
 0x15d   : > { %861 = vadd.xlane.f32.xlu2 %v860_v12 }
 0x15e   : > { %1159 = shalt.err (!%p1156_p3)
}
 0x15f   : > { %1076 = dma.vmem_to_hbm [thread:$0]  (%p1302_p5), %s895_s30, 256, %s897_s5, %s876_s6  }
 0x160   : > { %s907_s27 = scalar_lea.hbm %s1478_s4, %s1074_s23  ;;  %s201_s28 = scalar_lea.vmem [#allocation4], %s1010_s20 }
 0x161   : > { %s908_s29 = sshll.u32 %s201_s28, 4  ;;  %s910_s7 = sshll.u32 %s907_s27, 4  ;;  %s909_s29 = int_to_ptr.vmem [resolvable:$true] %s908_s29  ;;  %s911_s7 = int_to_ptr.hbm [resolvable:$true] %s910_s7 }
 0x162   : > { %s881_s30 = scalar_lea.sflag [#allocation5], %s1421_s14  ;;  %s1174_s5 = sshra.s32 %s911_s7, 4  ;;  %s1175_s5 = int_to_ptr.hbm [resolvable:$true] %s1174_s5 }
 0x163   : > { %s1176_s6 = scalar_lea.hbm %s1175_s5, 16  ;;  %s1180_s23 = scalar_lea.hbm %s1478_s4, 32 }
 0x164   : > { %p1177_p4 = scmp.ne.s32.totalorder %s1175_s5, %s1176_s6  ;;  %p1181_p9 = scmp.lt.s32.totalorder %s1175_s5, %s1478_s4 }
 0x165   : > { %p1182_p10 = scmp.lt.s32.totalorder %s1180_s23, %s1176_s6 }
 0x166   : > { %p1178_p7 = pnand %p1177_p4, %p1302_p5 }
 0x167   : > { %p1183_p11 = por %p1182_p10, %p1181_p9 }
 0x168   : > { %p1179_p8 = pneg %p1178_p7 }
 0x16a   : > { %p1184_p12 = pnand %p1183_p11, %p1179_p8 }
 0x1ce   : > { %v857_v13 = vpop.xlane.xlu1 %856 }
 0x1cf   : > { %865 = vperm.xlu0 %1131, %v857_v13  }
 0x1d0   : > { %v862_v14 = vpop.xlane.xlu2 %861 }
 0x1d7   : > { %870 = vperm.xlu0 %1131, %v862_v14  }
 0x241   : > { %v866_v15 = vpop.permute.xlu0 %865 }
 0x242   : > { %873 = vst [vmem:[%s201_s28] sm:$0xff] %v866_v15 }
 0x249   : > { %v871_v16 = vpop.permute.xlu0 %870 }
 0x24a   : > { %874 = vst [vmem:[%s201_s28 + $0x8] sm:$0xff] %v871_v16 }
 0x24b   : > { %1187 = shalt.err (!%p1184_p12)
}
 0x24c   : > { %s1237_s14 = smov 128   ;;  %s1238_s19 = smov 8  }
 0x24d   : > { %1077 = dma.vmem_to_hbm [thread:$0]  (%p1302_p5), %s909_s29, 256, %s911_s7, %s881_s30, %s1237_s14, %s1237_s14, %s1238_s19  }
 0x24e PF: > { %p1087_p13 = scmp.ge.s32.totalorder %s1226_s18, 2  ;;  %s925_s11 = sand.u32 1, %s1214_s15  }
 0x24f   : > { %s926_s12 = scalar_lea.sflag [#allocation3], %s925_s11 }
 0x250   : > { %p1081_p0 = pnand %p1087_p13, %p1306_p6 }
 0x252   : > { %p1082_p1 = pneg %p1081_p0 }
 0x254   : > { %1205 = dma.done.wait (%p1082_p1), %s926_s12, 256  }
 0x255   : > { %1207 = vsyncadd (%p1082_p1), %s926_s12, 4294967040  ;;  %s936_s13 = scalar_lea.sflag [#allocation5], %s925_s11 }
 0x256   : > { %1209 = dma.done.wait (%p1082_p1), %s936_s13, 256  }
 0x257   : > { %1211 = vsyncadd (%p1082_p1), %s936_s13, 4294967040  ;;  %p18_p5 = scmp.ge.s32.totalorder %s1289_s21, 4   ;;  %s1481_s15 = smov %s1218_s16 }
 0x258   : > { %s1482_s16 = smov %s1222_s17  ;;  %s1483_s17 = smov %s1300_s24 }
 0x259   : > { %s1484_s18 = smov %s1289_s21  ;;  %20 = sbr.rel (!%p18_p5) target bundleno = 5 (0x5), region = 99 }
 0x25e   :  { %942 = vsyncpa [#allocation3], 1 }
 0x25f   :  { %944 = vsyncpa [#allocation3 + $0x1], 1 }
 0x260   :  { %945 = vsyncpa [#allocation5], 1 }
 0x261   :  { %947 = vsyncpa [#allocation5 + $0x1], 1 }

</bundles_post_ra>
